<compile_context>
chip_gen: v7x
topology: tpu7x:2x2x1
jax: 0.10.0
libtpu: 0.0.40
codegen_flags: <defaults>
</compile_context>

<pallas_src>
import functools

import numpy as np

import jax
import jax.numpy as jnp
from jax.experimental import pallas as pl
from jax.experimental.pallas import tpu as pltpu


def _naf_kernel(action_dim,
                states_ref, actions_ref,
                w1_ref, w2_ref, wh_ref,
                diag_ref, stril_ref,
                out_ref):
    A = action_dim
    AA = A * A
    f32 = jnp.float32
    bf16 = jnp.bfloat16

    # Batch -> lanes via in-kernel transpose (XLU, otherwise idle here).
    st = states_ref[...].T                                  # (D, TB) f32
    tb = st.shape[1]
    ones = jnp.ones((1, tb), f32)

    # Layer 1:  x = relu(W1_aug @ [s^T; 1])   (bias folded as extra K row)
    x0 = jnp.concatenate([st, ones], axis=0).astype(bf16)   # (D+1, TB)
    x = jnp.dot(w1_ref[...], x0, preferred_element_type=f32)
    x = jnp.maximum(x, 0.0)                                  # (H, TB) f32

    # Layer 2
    x1 = jnp.concatenate([x.astype(bf16), ones.astype(bf16)], axis=0)
    x = jnp.dot(w2_ref[...], x1, preferred_element_type=f32)
    x = jnp.maximum(x, 0.0)                                  # (H, TB) f32

    # Fused heads: rows [0:A]=mu, [A]=V, [A+1:A+1+AA]=L-flat (row idx = i*A+k)
    x2 = jnp.concatenate([x.astype(bf16), ones.astype(bf16)], axis=0)
    h = jnp.dot(wh_ref[...], x2, preferred_element_type=f32)  # (HEADS, TB)
    th = jnp.tanh(h)                                           # one EUP pass
    mu = th[0:A, :]                                            # (A,  TB)
    v = h[A:A + 1, :]                                          # (1,  TB) no tanh
    lflat = th[A + 1:A + 1 + AA, :]                            # (AA, TB)

    d = actions_ref[...].T - mu                                # (A, TB)

    # LowerCholeskyTransform with constant masks:
    #   L[i,k] = exp(lflat[i*A+k]) if i==k ; lflat[i*A+k] if i>k ; 0 otherwise
    dm = diag_ref[...]                                         # (AA, 1)
    sm = stril_ref[...]                                        # (AA, 1)
    lmat = jnp.exp(lflat) * dm + lflat * sm                    # (AA, TB)

    # y[k,b] = sum_i d[i,b] * L[i,k,b]  ->  quad = ||L^T d||^2 = d^T P d
    y = d[0:1, :] * lmat[0:A, :]
    for i in range(1, A):
        y = y + d[i:i + 1, :] * lmat[i * A:(i + 1) * A, :]
    quad = jnp.sum(y * y, axis=0, keepdims=True)               # (1, TB)
    q = v - 5.0 * quad                                          # -0.5*10*quad + V

    # Lane-dense fused output slab: rows [0:A]=mu, [A]=Q, [A+1]=V.
    out_ref[0:A, :] = mu.astype(out_ref.dtype)
    out_ref[A:A + 1, :] = q.astype(out_ref.dtype)
    out_ref[A + 1:A + 2, :] = v.astype(out_ref.dtype)


def naf_qnet_forward(states, actions, params, *, action_dim, tile_b=None):
    B, D = states.shape
    A = action_dim
    H = params["w1"].shape[0]
    AA = A * A
    HEADS = A + 1 + AA
    OUT_ROWS = A + 2

    # Batch tile: capped (VMEM + v7x portability), >= 2 grid steps when B>=256
    # and 128-aligned so both v7x TensorCores get work; full batch otherwise.
    if tile_b is None:
        if B % 128 != 0 or B < 256:
            tile_b = B
        else:
            tile_b = min(1024, B // 2)
            tile_b -= tile_b % 128
            while B % tile_b != 0:
                tile_b -= 128
    assert B % tile_b == 0, "batch must be a multiple of the batch tile"
    grid = (B // tile_b,)

    bf16 = jnp.bfloat16
    # Bias folded as an extra K column; MXU operands pre-cast to bf16.
    w1a = jnp.concatenate([params["w1"], params["b1"][:, None]], axis=1).astype(bf16)
    w2a = jnp.concatenate([params["w2"], params["b2"][:, None]], axis=1).astype(bf16)
    wh = jnp.concatenate([params["wmu"], params["wv"], params["wl"]], axis=0)
    bh = jnp.concatenate([params["bmu"], params["bv"], params["bl"]], axis=0)
    wha = jnp.concatenate([wh, bh[:, None]], axis=1).astype(bf16)    # (HEADS, H+1)

    # Compile-time LowerCholesky masks (diag / strict lower), tiny resident inputs.
    rows = np.arange(AA)
    i_idx, k_idx = rows // A, rows % A
    diag_mask = jnp.asarray((i_idx == k_idx).astype(np.float32)[:, None])   # (AA, 1)
    stril_mask = jnp.asarray((i_idx > k_idx).astype(np.float32)[:, None])   # (AA, 1)

    in_specs = [
        pl.BlockSpec((tile_b, D), lambda i: (i, 0)),        # states (row-major)
        pl.BlockSpec((tile_b, A), lambda i: (i, 0)),        # actions (row-major)
        pl.BlockSpec((H, D + 1), lambda i: (0, 0)),         # W1 | b1 (bf16, resident)
        pl.BlockSpec((H, H + 1), lambda i: (0, 0)),         # W2 | b2
        pl.BlockSpec((HEADS, H + 1), lambda i: (0, 0)),     # fused head W | b
        pl.BlockSpec((AA, 1), lambda i: (0, 0)),            # diag mask
        pl.BlockSpec((AA, 1), lambda i: (0, 0)),            # strict-lower mask
    ]
    out_specs = pl.BlockSpec((OUT_ROWS, tile_b), lambda i: (0, i))
    out_shape = jax.ShapeDtypeStruct((OUT_ROWS, B), jnp.float32)

    cost = pl.CostEstimate(
        flops=2 * B * ((D + 1) * H + (H + 1) * H + (H + 1) * HEADS) + 6 * B * AA,
        transcendentals=B * (HEADS + AA),
        bytes_accessed=4 * B * (D + A + OUT_ROWS)
                       + 2 * (H * (D + 1) + H * (H + 1) + HEADS * (H + 1)),
    )

    kernel = functools.partial(_naf_kernel, A)
    out_t = pl.pallas_call(
        kernel,
        grid=grid,
        in_specs=in_specs,
        out_specs=out_specs,
        out_shape=out_shape,
        compiler_params=pltpu.CompilerParams(
            dimension_semantics=("parallel",),
            vmem_limit_bytes=32 * 1024 * 1024),
        cost_estimate=cost,
    )(states, actions, w1a, w2a, wha, diag_mask, stril_mask)

    mu = out_t[:A, :].T            # (B, A)
    q = out_t[A:A + 1, :].T        # (B, 1)
    v = out_t[A + 1:A + 2, :].T    # (B, 1)
    return mu, q, v


def init_params(key, input_dim, action_dim, hidden_dim):
    """PyTorch nn.Linear-style init, weights kept in the (out, in) layout."""
    def linear(k, fan_in, fan_out):
        kw, kb = jax.random.split(k)
        bound = 1.0 / (fan_in ** 0.5)
        w = jax.random.uniform(kw, (fan_out, fan_in), jnp.float32, -bound, bound)
        b = jax.random.uniform(kb, (fan_out,), jnp.float32, -bound, bound)
        return w, b

    k1, k2, k3, k4, k5 = jax.random.split(key, 5)
    p = {}
    p["w1"], p["b1"] = linear(k1, input_dim, hidden_dim)
    p["w2"], p["b2"] = linear(k2, hidden_dim, hidden_dim)
    p["wmu"], p["bmu"] = linear(k3, hidden_dim, action_dim)
    p["wv"], p["bv"] = linear(k4, hidden_dim, 1)
    p["wl"], p["bl"] = linear(k5, hidden_dim, action_dim * action_dim)
    return p


def reference_forward(states, actions, params, action_dim):
    """Pure-JAX (f32) mirror of the PyTorch forward, for correctness checks."""
    x = jax.nn.relu(states @ params["w1"].T + params["b1"])
    x = jax.nn.relu(x @ params["w2"].T + params["b2"])
    mu = jnp.tanh(x @ params["wmu"].T + params["bmu"])
    v = x @ params["wv"].T + params["bv"]

    A = action_dim
    L = jnp.tanh(x @ params["wl"].T + params["bl"]).reshape(-1, A, A)
    # LowerCholeskyTransform: strict lower triangle + exp(diagonal)
    diag = jnp.exp(jnp.diagonal(L, axis1=-2, axis2=-1))   # (B, A)
    Lc = jnp.tril(L, -1) + jax.vmap(jnp.diag)(diag)
    P = Lc @ jnp.swapaxes(Lc, -1, -2)
    a_mu = (actions - mu)[..., None]                      # (B, A, 1)
    adv = -0.5 * 10.0 * jnp.squeeze(
        jnp.swapaxes(a_mu, -1, -2) @ P @ a_mu, axis=2)    # (B, 1)
    q = adv + v
    return mu, q, v


def _check(batch, input_dim, action_dim, hidden_dim, key):
    kp, ks, ka = jax.random.split(key, 3)
    params = init_params(kp, input_dim, action_dim, hidden_dim)
    states = jax.random.normal(ks, (batch, input_dim), jnp.float32)
    actions = jnp.tanh(jax.random.normal(ka, (batch, action_dim), jnp.float32))

    mu, q, v = naf_qnet_forward(states, actions, params, action_dim=action_dim)
    jax.block_until_ready((mu, q, v))

    mu_r, q_r, v_r = reference_forward(states, actions, params, action_dim)
    # bf16 MXU operands (f32 accumulation) -> loosened tolerances vs pure f32.
    assert jnp.allclose(mu, mu_r, atol=2e-2, rtol=2e-2)
    assert jnp.allclose(v, v_r, atol=2e-2, rtol=2e-2)
    assert jnp.allclose(q, q_r, atol=2e-1, rtol=1e-1)


if __name__ == "__main__":
    input_dim, action_dim, hidden_dim = 16, 4, 32
    key = jax.random.PRNGKey(0)
    k_small, k_big = jax.random.split(key)

    # Small batch: single resident grid step.
    _check(16, input_dim, action_dim, hidden_dim, k_small)
    # Larger batch: exercises the capped tile_b=128 path with a 2-step grid.
    _check(256, input_dim, action_dim, hidden_dim, k_big)

    print("KERNEL_OK")
</pallas_src>

<mosaic_0001>
module attributes {stable_mosaic.version = 11 : i64} {
  func.func @_naf_kernel(%arg0: i32, %arg1: memref<16x16xf32, #tpu.memory_space<vmem>>, %arg2: memref<16x4xf32, #tpu.memory_space<vmem>>, %arg3: memref<32x17xbf16, #tpu.memory_space<vmem>>, %arg4: memref<32x33xbf16, #tpu.memory_space<vmem>>, %arg5: memref<21x33xbf16, #tpu.memory_space<vmem>>, %arg6: memref<16x1xf32, #tpu.memory_space<vmem>>, %arg7: memref<16x1xf32, #tpu.memory_space<vmem>>, %arg8: memref<6x16xf32, #tpu.memory_space<vmem>>) attributes {dimension_semantics = [#tpu.dimension_semantics<parallel>], iteration_bounds = array<i64: 1>, scalar_prefetch = 0 : i64, scratch_operands = 0 : i64, tpu.core_type = #tpu.core_type<tc>, window_params = [{transform_indices = @transform_0, window_bounds = array<i64: 16, 16>}, {transform_indices = @transform_1, window_bounds = array<i64: 16, 4>}, {pipeline_mode = #tpu.pipeline_mode<synchronous>, transform_indices = @transform_2, window_bounds = array<i64: 32, 17>}, {pipeline_mode = #tpu.pipeline_mode<synchronous>, transform_indices = @transform_3, window_bounds = array<i64: 32, 33>}, {pipeline_mode = #tpu.pipeline_mode<synchronous>, transform_indices = @transform_4, window_bounds = array<i64: 21, 33>}, {pipeline_mode = #tpu.pipeline_mode<synchronous>, transform_indices = @transform_5, window_bounds = array<i64: 16, 1>}, {pipeline_mode = #tpu.pipeline_mode<synchronous>, transform_indices = @transform_6, window_bounds = array<i64: 16, 1>}, {transform_indices = @transform_7, window_bounds = array<i64: 6, 16>}]} {
    %c0 = arith.constant 0 : index
    %c0_0 = arith.constant 0 : index
    %0 = vector.load %arg1[%c0, %c0_0] : memref<16x16xf32, #tpu.memory_space<vmem>>, vector<16x16xf32>
    %1 = tpu.transpose %0, [1, 0] : vector<16x16xf32> -> vector<16x16xf32>
    %cst = arith.constant 1.000000e+00 : f32
    %2 = vector.broadcast %cst : f32 to vector<1x16xf32>
    %3 = tpu.concatenate %1, %2 in 0 : vector<16x16xf32>, vector<1x16xf32> -> vector<17x16xf32>
    %4 = arith.truncf %3 : vector<17x16xf32> to vector<17x16xbf16>
    %c0_1 = arith.constant 0 : index
    %c0_2 = arith.constant 0 : index
    %5 = vector.load %arg3[%c0_1, %c0_2] : memref<32x17xbf16, #tpu.memory_space<vmem>>, vector<32x17xbf16>
    %cst_3 = arith.constant dense<0.000000e+00> : vector<32x16xf32>
    %6 = tpu.matmul %5, %4, %cst_3 {dimension_numbers = #tpu.dot_dimension_numbers<[1], [0], [0], [1], [0, 0, 1, 1], [], []>} : vector<32x17xbf16>, vector<17x16xbf16>, vector<32x16xf32> -> vector<32x16xf32>
    %cst_4 = arith.constant 0.000000e+00 : f32
    %7 = vector.broadcast %cst_4 : f32 to vector<32x16xf32>
    %8 = arith.maximumf %6, %7 : vector<32x16xf32>
    %9 = arith.truncf %8 : vector<32x16xf32> to vector<32x16xbf16>
    %10 = arith.truncf %2 : vector<1x16xf32> to vector<1x16xbf16>
    %11 = tpu.concatenate %9, %10 in 0 : vector<32x16xbf16>, vector<1x16xbf16> -> vector<33x16xbf16>
    %c0_5 = arith.constant 0 : index
    %c0_6 = arith.constant 0 : index
    %12 = vector.load %arg4[%c0_5, %c0_6] : memref<32x33xbf16, #tpu.memory_space<vmem>>, vector<32x33xbf16>
    %cst_7 = arith.constant dense<0.000000e+00> : vector<32x16xf32>
    %13 = tpu.matmul %12, %11, %cst_7 {dimension_numbers = #tpu.dot_dimension_numbers<[1], [0], [0], [1], [0, 0, 1, 1], [], []>} : vector<32x33xbf16>, vector<33x16xbf16>, vector<32x16xf32> -> vector<32x16xf32>
    %cst_8 = arith.constant 0.000000e+00 : f32
    %14 = vector.broadcast %cst_8 : f32 to vector<32x16xf32>
    %15 = arith.maximumf %13, %14 : vector<32x16xf32>
    %16 = arith.truncf %15 : vector<32x16xf32> to vector<32x16xbf16>
    %17 = arith.truncf %2 : vector<1x16xf32> to vector<1x16xbf16>
    %18 = tpu.concatenate %16, %17 in 0 : vector<32x16xbf16>, vector<1x16xbf16> -> vector<33x16xbf16>
    %c0_9 = arith.constant 0 : index
    %c0_10 = arith.constant 0 : index
    %19 = vector.load %arg5[%c0_9, %c0_10] : memref<21x33xbf16, #tpu.memory_space<vmem>>, vector<21x33xbf16>
    %cst_11 = arith.constant dense<0.000000e+00> : vector<21x16xf32>
    %20 = tpu.matmul %19, %18, %cst_11 {dimension_numbers = #tpu.dot_dimension_numbers<[1], [0], [0], [1], [0, 0, 1, 1], [], []>} : vector<21x33xbf16>, vector<33x16xbf16>, vector<21x16xf32> -> vector<21x16xf32>
    %21 = math.tanh %20 : vector<21x16xf32>
    %22 = vector.extract_strided_slice %21 {offsets = [0, 0], sizes = [4, 16], strides = [1, 1]} : vector<21x16xf32> to vector<4x16xf32>
    %23 = vector.extract_strided_slice %20 {offsets = [4, 0], sizes = [1, 16], strides = [1, 1]} : vector<21x16xf32> to vector<1x16xf32>
    %24 = vector.extract_strided_slice %21 {offsets = [5, 0], sizes = [16, 16], strides = [1, 1]} : vector<21x16xf32> to vector<16x16xf32>
    %c0_12 = arith.constant 0 : index
    %c0_13 = arith.constant 0 : index
    %25 = vector.load %arg2[%c0_12, %c0_13] : memref<16x4xf32, #tpu.memory_space<vmem>>, vector<16x4xf32>
    %26 = tpu.transpose %25, [1, 0] : vector<16x4xf32> -> vector<4x16xf32>
    %27 = arith.subf %26, %22 : vector<4x16xf32>
    %c0_14 = arith.constant 0 : index
    %c0_15 = arith.constant 0 : index
    %28 = vector.load %arg6[%c0_14, %c0_15] : memref<16x1xf32, #tpu.memory_space<vmem>>, vector<16x1xf32>
    %c0_16 = arith.constant 0 : index
    %c0_17 = arith.constant 0 : index
    %29 = vector.load %arg7[%c0_16, %c0_17] : memref<16x1xf32, #tpu.memory_space<vmem>>, vector<16x1xf32>
    %30 = math.exp %24 : vector<16x16xf32>
    %31 = vector.broadcast %28 : vector<16x1xf32> to vector<16x16xf32>
    %32 = arith.mulf %30, %31 : vector<16x16xf32>
    %33 = vector.broadcast %29 : vector<16x1xf32> to vector<16x16xf32>
    %34 = arith.mulf %24, %33 : vector<16x16xf32>
    %35 = arith.addf %32, %34 : vector<16x16xf32>
    %36 = vector.extract_strided_slice %27 {offsets = [0, 0], sizes = [1, 16], strides = [1, 1]} : vector<4x16xf32> to vector<1x16xf32>
    %37 = vector.extract_strided_slice %35 {offsets = [0, 0], sizes = [4, 16], strides = [1, 1]} : vector<16x16xf32> to vector<4x16xf32>
    %38 = vector.broadcast %36 : vector<1x16xf32> to vector<4x16xf32>
    %39 = arith.mulf %38, %37 : vector<4x16xf32>
    %40 = vector.extract_strided_slice %27 {offsets = [1, 0], sizes = [1, 16], strides = [1, 1]} : vector<4x16xf32> to vector<1x16xf32>
    %41 = vector.extract_strided_slice %35 {offsets = [4, 0], sizes = [4, 16], strides = [1, 1]} : vector<16x16xf32> to vector<4x16xf32>
    %42 = vector.broadcast %40 : vector<1x16xf32> to vector<4x16xf32>
    %43 = arith.mulf %42, %41 : vector<4x16xf32>
    %44 = arith.addf %39, %43 : vector<4x16xf32>
    %45 = vector.extract_strided_slice %27 {offsets = [2, 0], sizes = [1, 16], strides = [1, 1]} : vector<4x16xf32> to vector<1x16xf32>
    %46 = vector.extract_strided_slice %35 {offsets = [8, 0], sizes = [4, 16], strides = [1, 1]} : vector<16x16xf32> to vector<4x16xf32>
    %47 = vector.broadcast %45 : vector<1x16xf32> to vector<4x16xf32>
    %48 = arith.mulf %47, %46 : vector<4x16xf32>
    %49 = arith.addf %44, %48 : vector<4x16xf32>
    %50 = vector.extract_strided_slice %27 {offsets = [3, 0], sizes = [1, 16], strides = [1, 1]} : vector<4x16xf32> to vector<1x16xf32>
    %51 = vector.extract_strided_slice %35 {offsets = [12, 0], sizes = [4, 16], strides = [1, 1]} : vector<16x16xf32> to vector<4x16xf32>
    %52 = vector.broadcast %50 : vector<1x16xf32> to vector<4x16xf32>
    %53 = arith.mulf %52, %51 : vector<4x16xf32>
    %54 = arith.addf %49, %53 : vector<4x16xf32>
    %55 = arith.mulf %54, %54 : vector<4x16xf32>
    %cst_18 = arith.constant dense<0.000000e+00> : vector<16xf32>
    %56 = vector.multi_reduction <add>, %55, %cst_18 [0] : vector<4x16xf32> to vector<16xf32>
    %57 = vector.shape_cast %56 : vector<16xf32> to vector<1x16xf32>
    %cst_19 = arith.constant 5.000000e+00 : f32
    %58 = vector.broadcast %cst_19 : f32 to vector<1x16xf32>
    %59 = arith.mulf %58, %57 : vector<1x16xf32>
    %60 = arith.subf %23, %59 : vector<1x16xf32>
    %c0_20 = arith.constant 0 : index
    %c0_21 = arith.constant 0 : index
    %61 = vector.load %arg8[%c0_20, %c0_21] : memref<6x16xf32, #tpu.memory_space<vmem>>, vector<4x16xf32>
    tpu.vector_store %arg8[%c0_20, %c0_21], %22 {strides = array<i32>} : memref<6x16xf32, #tpu.memory_space<vmem>>, vector<4x16xf32>,
    %c4 = arith.constant 4 : index
    %c0_22 = arith.constant 0 : index
    %62 = vector.load %arg8[%c4, %c0_22] : memref<6x16xf32, #tpu.memory_space<vmem>>, vector<1x16xf32>
    tpu.vector_store %arg8[%c4, %c0_22], %60 {strides = array<i32>} : memref<6x16xf32, #tpu.memory_space<vmem>>, vector<1x16xf32>,
    %c5 = arith.constant 5 : index
    %c0_23 = arith.constant 0 : index
    %63 = vector.load %arg8[%c5, %c0_23] : memref<6x16xf32, #tpu.memory_space<vmem>>, vector<1x16xf32>
    tpu.vector_store %arg8[%c5, %c0_23], %23 {strides = array<i32>} : memref<6x16xf32, #tpu.memory_space<vmem>>, vector<1x16xf32>,
    return
  }
  func.func @transform_0(%arg0: i32) -> (i32, i32) {
    %c0_i32 = arith.constant 0 : i32
    %c0_i32_0 = arith.constant 0 : i32
    return %arg0, %c0_i32 : i32, i32
  }
  func.func @transform_1(%arg0: i32) -> (i32, i32) {
    %c0_i32 = arith.constant 0 : i32
    %c0_i32_0 = arith.constant 0 : i32
    return %arg0, %c0_i32 : i32, i32
  }
  func.func @transform_2(%arg0: i32) -> (i32, i32) {
    %c0_i32 = arith.constant 0 : i32
    %c0_i32_0 = arith.constant 0 : i32
    %c0_i32_1 = arith.constant 0 : i32
    return %c0_i32, %c0_i32_0 : i32, i32
  }
  func.func @transform_3(%arg0: i32) -> (i32, i32) {
    %c0_i32 = arith.constant 0 : i32
    %c0_i32_0 = arith.constant 0 : i32
    %c0_i32_1 = arith.constant 0 : i32
    return %c0_i32, %c0_i32_0 : i32, i32
  }
  func.func @transform_4(%arg0: i32) -> (i32, i32) {
    %c0_i32 = arith.constant 0 : i32
    %c0_i32_0 = arith.constant 0 : i32
    %c0_i32_1 = arith.constant 0 : i32
    return %c0_i32, %c0_i32_0 : i32, i32
  }
  func.func @transform_5(%arg0: i32) -> (i32, i32) {
    %c0_i32 = arith.constant 0 : i32
    %c0_i32_0 = arith.constant 0 : i32
    %c0_i32_1 = arith.constant 0 : i32
    return %c0_i32, %c0_i32_0 : i32, i32
  }
  func.func @transform_6(%arg0: i32) -> (i32, i32) {
    %c0_i32 = arith.constant 0 : i32
    %c0_i32_0 = arith.constant 0 : i32
    %c0_i32_1 = arith.constant 0 : i32
    return %c0_i32, %c0_i32_0 : i32, i32
  }
  func.func @transform_7(%arg0: i32) -> (i32, i32) {
    %c0_i32 = arith.constant 0 : i32
    %c0_i32_0 = arith.constant 0 : i32
    return %c0_i32, %arg0 : i32, i32
  }
}

</mosaic_0001>

<bundles_post_ra>
// kernel: tpu_custom_call.1
= control target key start
LH: loop header
LB: loop body
LE: loop exit
PB: predicated region body
PF: predicated region fallthrough
CT: control target
= control target key end

     0   :  { %s660_s0 = inlined_call_operand.vmem [shape: f32[16,16], index: 0, kind: input, shape index: {}]   ;;  %s661_s1 = inlined_call_operand.vmem [shape: f32[16,4], index: 1, kind: input, shape index: {}]   ;;  %s662_s2 = inlined_call_operand.vmem [shape: bf16[32,17], index: 2, kind: input, shape index: {}]   ;;  %s663_s3 = inlined_call_operand.vmem [shape: bf16[32,33], index: 3, kind: input, shape index: {}]   ;;  %s664_s4 = inlined_call_operand.vmem [shape: bf16[21,33], index: 4, kind: input, shape index: {}]   ;;  %s665_s5 = inlined_call_operand.vmem [shape: f32[16,1], index: 5, kind: input, shape index: {}]   ;;  %s666_s6 = inlined_call_operand.vmem [shape: f32[16,1], index: 6, kind: input, shape index: {}]   ;;  %s667_s7 = inlined_call_operand.hbm [shape: f32[6,16], index: 7, kind: output, shape index: {}]  }
   0x1   :  { %v29_v0 = vld [vmem:[%s660_s0] sm:$0xff]  ;;  %v30_v1 = vld [vmem:[%s660_s0 + $0x8] sm:$0xff] }
   0x2   :  { %31 = vxpose.xlu0.b32.start [1/2] (short) (narrow) %v29_v0, 16 }
   0x3   :  { %12 = vsyncpa [#allocation3], 0  ;;  %v549_v2 = vmov 0   ;;  %v507_v3 = vld [vmem:[%s662_s2] sm:$0xff]   ;;  %vm79_vm0 = vcmask 138240   ;;  %vm86_vm1 = vcmask 1040384   ;;  %v377_v53 = vlaneseq }
   0x4   :  { %505 = vset.pattern.permute.xlu1 %v549_v2  ;;  %478 = vmatprep.mubr.msk.bf16.mxu0 %vm79_vm0, %v507_v3  ;;  %v88_v5 = vsel %vm86_vm1, 65535, %v549_v2  ;;  %v508_v9 = vld [vmem:[%s662_s2 + $0x8] sm:$0xff]   ;;  %v509_v10 = vld [vmem:[%s663_s3] sm:$0xff]   ;;  %vm161_vm2 = vcmask 269312   ;;  %vm431_vm3 = vcmask 126980   ;;  %vm420_vm4 = vcmask 125952  }
   0x5   :  { %v90_v8 = vand.u32 1.0|1.0, %v88_v5  ;;  %488 = vmatprep.mubr.msk.bf16.mxu1 %vm161_vm2, %v509_v10  ;;  %v169_v21 = vand.u32 1065369472, %v88_v5  ;;  %v510_v22 = vld [vmem:[%s663_s3 + $0x8] sm:$0xff]   ;;  %v511_v23 = vld [vmem:[%s664_s4] sm:$0xff]  }
   0x6   :  { %32 = vxpose.xlu0.b32.end [2/2] (short) (narrow) %v30_v1, 16  ;;  %v329_v24 = vld [vmem:[%s665_s5] sm:$0xff]  ;;  %v330_v26 = vld [vmem:[%s665_s5 + $0x8] sm:$0xff]  ;;  %v378_v56 = vshrl.u32 %v377_v53, 7  ;;  %vm347_vm5 = vcmask 1044480   ;;  %vm415_vm6 = vcmask 1042432  }
   0x7   :  { %341 = vperm.xlu1 %505, %v329_v24   ;;  %v331_v25 = vld [vmem:[%s666_s6] sm:$0xff]  ;;  %v332_v27 = vld [vmem:[%s666_s6 + $0x8] sm:$0xff] }
   0x8   :  { %v294_v28 = vld [vmem:[%s661_s1] sm:$0xff]  ;;  %v295_v29 = vld [vmem:[%s661_s1 + $0x8] sm:$0xff]  ;;  %v395_v62 = vsub.s32 2, %v378_v56  ;;  %v403_v63 = vsub.s32 3, %v378_v56  ;;  %s550_s1 = smov [#allocation2]  }
   0x9   :  { %v512_v40 = vld [vmem:[%s664_s4 + $0x8] ss:$0 sps:$4 sm:$0x77]   ;;  %s440_s4 = sshll.u32 %s550_s1, 4  ;;  %s441_s4 = int_to_ptr.vmem [resolvable:$true] %s440_s4 }
   0xa   :  { %s525_s24 = scalar_lea.vmem %s441_s4, 128  ;;  %p530_p1 = scmp.lt.s32.totalorder %s441_s4, %s441_s4 }
   0xb   :  { %345 = vperm.xlu1 %505, %v330_v26   ;;  %p526_p0 = scmp.ne.s32.totalorder %s441_s4, %s525_s24  ;;  %p531_p2 = scmp.lt.s32.totalorder %s525_s24, %s525_s24 }
   0xd   :  { %p532_p3 = por %p531_p2, %p530_p1 }
   0xf   :  { %363 = vperm.xlu1 %505, %v332_v27   ;;  %p533_p4 = pnand %p532_p3, %p526_p0 }
  0x2f   :  { %506 = vset.pattern.permute.xlu0 %v549_v2 }
  0x30   :  { %359 = vperm.xlu0 %506, %v331_v25  }
  0x38   :  { %296 = vxpose.xlu1.b32.start [1/2] (short) (narrow) %v294_v28, 8 }
  0x3c   :  { %297 = vxpose.xlu1.b32.end [2/2] (short) (narrow) %v295_v29, 8 }
  0x82   :  { %v47_v4 = vpop.trf.xlu0 }
  0x86   :  { %v48_v6 = vpop.trf.xlu0  ;;  %v342_v45 = vpop.permute.xlu1 %341 }
  0x87   :  { %v63_v7 = vpack.c.bf16 %v48_v6, %v47_v4  ;;  %v348_v58 = vrot.slane %v342_v45, 3  ;;  %v379_v6 = vsub.s32 0, %v378_v56 }
  0x89   :  { %474 = vmatprep.subr.bf16.mxu0 %v63_v7 }
  0x8a   :  { %475 = vmatpush3.bf16.msra.mxu0 %v63_v7  ;;  %v346_v46 = vpop.permute.xlu1 %345  ;;  %v385_v7 = vsub.s32 1, %v378_v56 }
  0x8b   :  { %476 = vmatprep.subr.bf16.mxu0 %v90_v8  ;;  %v349_v59 = vrot.slane %v346_v46, 3 }
  0x8d   :  { %v350_v5 = vsel %vm347_vm5, %v348_v58, %v349_v59 }
  0x8e   :  { %477 = vmatpush3.bf16.msra.mxu0 %v90_v8  ;;  %v364_v54 = vpop.permute.xlu1 %363 }
  0x8f   :  { %v366_v61 = vrot.slane %v364_v54, 3 }
  0x91   :  { %479 = vmatmul.mubr.msk.bf16.vlgmr.msra.gmra.mrb[0].mxu0 %vm79_vm0, %v508_v9 }
  0x92   :  { %498 = vmatprep.mubr.msk.bf16.mxu0 %vm161_vm2, %v511_v23 }
  0xaf   :  { %v360_v55 = vpop.permute.xlu0 %359 }
  0xb0   :  { %v365_v60 = vrot.slane %v360_v55, 3 }
  0xb2   :  { %v367_v10 = vsel %vm347_vm5, %v365_v60, %v366_v61 }
  0xb8   :  { %v312_v57 = vpop.trf.xlu1 }
 0x164   :  { %v480_v11 = vpop.f32.mrb[0].mxu0 }
 0x165   :  { %v126_v12 = vpop.f32.mrb[1].mxu0  ;;  %v143_v14 = vmax.f32 %v480_v11, 0.0 }
 0x166   :  { %v481_v13 = vpop.f32.mrb[2].mxu0  ;;  %v141_v17 = vmax.f32 %v126_v12, 0.0 }
 0x167   :  { %v144_v15 = vmax.f32 %v481_v13, 0.0  ;;  %v129_v16 = vpop.f32.mrb[3].mxu0 }
 0x168   :  { %v142_v18 = vmax.f32 %v129_v16, 0.0 }
 0x169   :  { %v146_v19 = vpack.c.bf16 %v144_v15, %v143_v14 }
 0x16a   :  { %v145_v20 = vpack.c.bf16 %v142_v18, %v141_v17 }
 0x16c   :  { %482 = vmatprep.subr.bf16.mxu1 %v145_v20 }
 0x16d   :  { %483 = vmatpush3.bf16.msra.mxu1 %v145_v20 }
 0x16e   :  { %484 = vmatprep.subr.bf16.mxu1 %v146_v19 }
 0x171   :  { %485 = vmatpush3.bf16.msra.mxu1 %v146_v19 }
 0x172   :  { %486 = vmatprep.subr.bf16.mxu1 %v169_v21 }
 0x175   :  { %487 = vmatpush3.bf16.msra.mxu1 %v169_v21 }
 0x178   :  { %489 = vmatmul.mubr.msk.bf16.vlgmr.msra.gmra.mrb[0].mxu1 %vm161_vm2, %v510_v22 }
 0x24b   :  { %v490_v30 = vpop.f32.mrb[0].mxu1 }
 0x24c   :  { %v205_v31 = vpop.f32.mrb[1].mxu1  ;;  %v222_v33 = vmax.f32 %v490_v30, 0.0 }
 0x24d   :  { %v491_v32 = vpop.f32.mrb[2].mxu1  ;;  %v220_v36 = vmax.f32 %v205_v31, 0.0 }
 0x24e   :  { %v223_v34 = vmax.f32 %v491_v32, 0.0  ;;  %v208_v35 = vpop.f32.mrb[3].mxu1 }
 0x24f   :  { %v221_v37 = vmax.f32 %v208_v35, 0.0 }
 0x250   :  { %v225_v38 = vpack.c.bf16 %v223_v34, %v222_v33 }
 0x251   :  { %v224_v39 = vpack.c.bf16 %v221_v37, %v220_v36 }
 0x253   :  { %492 = vmatprep.subr.bf16.mxu0 %v224_v39 }
 0x254   :  { %493 = vmatpush3.bf16.msra.mxu0 %v224_v39 }
 0x255   :  { %494 = vmatprep.subr.bf16.mxu0 %v225_v38 }
 0x258   :  { %495 = vmatpush3.bf16.msra.mxu0 %v225_v38 }
 0x259   :  { %496 = vmatprep.subr.bf16.mxu0 %v169_v21 }
 0x25c   :  { %497 = vmatpush3.bf16.msra.mxu0 %v169_v21 }
 0x25f   :  { %499 = vmatmul.mubr.msk.bf16.vlgmr.msra.gmra.mrb[4].mxu0 %vm161_vm2, %v512_v40 }
 0x332   :  { %v500_v41 = vpop.f32.mrb[4].mxu0 }
 0x333   :  { %513 = vtanh.f32 %v500_v41  ;;  %v637_v42 = vpop.f32.mrb[5].mxu0 }
 0x334   :  { %515 = vtanh.f32 %v637_v42  ;;  %433 = vst.msk [vmem:[#allocation2 + $0x1] sm:$0x10] %vm431_vm3, %v637_v42  ;;  %v501_v43 = vpop.f32.mrb[6].mxu0 }
 0x335   :  { %v280_v44 = vpop.f32.mrb[7].mxu0 }
 0x336   :  { %517 = vtanh.f32 %v280_v44 }
 0x33d   :  { %v514_v47 = vpop.eup %513 }
 0x33e   :  { %v516_v48 = vpop.eup %515  ;;  %v337_v49 = vmul.f32 1.442695, %v514_v47  ;;  %v373_v3 = vmul.f32 %v514_v47, %v366_v61 }
 0x33f   :  { %v333_v50 = vmul.f32 1.442695, %v516_v48  ;;  %430 = vst.msk [vmem:[#allocation2] sm:$0xf] %vm420_vm4, %v516_v48  ;;  %v328_v0 = vsub.f32 %v312_v57, %v516_v48  ;;  %v371_v16 = vmul.f32 %v516_v48, %v365_v60 }
 0x340   :  { %v518_v51 = vpop.eup %517  ;;  %519 = vpow2.f32 %v337_v49 }
 0x341   :  { %v335_v52 = vmul.f32 1.442695, %v518_v51  ;;  %521 = vpow2.f32 %v333_v50  ;;  %v396_v12 = vrot.slane %v328_v0, %v395_v62  ;;  %v404_v13 = vrot.slane %v328_v0, %v403_v63 }
 0x342   :  { %v372_v15 = vmul.f32 %v518_v51, %v367_v10  ;;  %v380_v21 = vrot.slane %v328_v0, %v379_v6  ;;  %v386_v22 = vrot.slane %v328_v0, %v385_v7 }
 0x343   :  { %523 = vpow2.f32 %v335_v52 }
 0x34a   :  { %v520_v1 = vpop.eup %519 }
 0x34b   :  { %v522_v2 = vpop.eup %521  ;;  %v356_v4 = vmul.f32 %v520_v1, %v349_v59 }
 0x34c   :  { %v354_v8 = vmul.f32 %v522_v2, %v348_v58 }
 0x34d   :  { %v524_v9 = vpop.eup %523  ;;  %v376_v11 = vadd.f32 %v373_v3, %v356_v4 }
 0x34e   :  { %v355_v14 = vmul.f32 %v524_v9, %v350_v5  ;;  %v374_v20 = vadd.f32 %v371_v16, %v354_v8 }
 0x34f   :  { %v398_v17 = vmul.f32 %v396_v12, %v376_v11  ;;  %v405_v18 = vmul.f32 %v404_v13, %v376_v11 }
 0x350   :  { %v375_v19 = vadd.f32 %v372_v15, %v355_v14  ;;  %v381_v26 = vmul.f32 %v380_v21, %v374_v20 }
 0x351   :  { %v407_v32 = vrot.slane %v405_v18, 4 }
 0x352   :  { %v382_v23 = vmul.f32 %v380_v21, %v375_v19  ;;  %v387_v24 = vmul.f32 %v386_v22, %v375_v19  ;;  %v397_v25 = vmul.f32 %v396_v12, %v375_v19 }
 0x354   :  { %v389_v27 = vrot.slane %v387_v24, 4 }
 0x356   :  { %v391_v28 = vadd.f32 %v389_v27, %v381_v26  ;;  %v392_v29 = vadd.f32 %v389_v27, %v382_v23 }
 0x358   :  { %v399_v30 = vadd.f32 %v397_v25, %v391_v28  ;;  %v400_v31 = vadd.f32 %v398_v17, %v392_v29 }
 0x35a   :  { %v409_v33 = vadd.f32 %v407_v32, %v399_v30  ;;  %v410_v34 = vadd.f32 %v407_v32, %v400_v31 }
 0x35c   :  { %v411_v35 = vmul.f32 %v409_v33, %v409_v33  ;;  %v412_v36 = vmul.f32 %v410_v34, %v410_v34 }
 0x35e   :  { %v416_v37 = vrot.slane %v411_v35, 5  ;;  %v417_v38 = vrot.slane %v412_v36, 5 }
 0x360   :  { %v418_v39 = vsel %vm415_vm6, %v416_v37, %v417_v38 }
 0x361   :  { %v421_v40 = vsel %vm420_vm4, %v418_v39, 0.0 }
 0x362   :  { %v422_v41 = vrot.slane %v421_v40, 4 }
 0x364   :  { %v423_v43 = vadd.f32 %v422_v41, %v421_v40 }
 0x366   :  { %v424_v44 = vrot.slane %v423_v43, 2 }
 0x368   :  { %v425_v45 = vadd.f32 %v424_v44, %v423_v43 }
 0x36a   :  { %v426_v46 = vrot.slane %v425_v45, 1 }
 0x36c   :  { %v427_v47 = vadd.f32 %v426_v46, %v425_v45 }
 0x36e   :  { %v428_v48 = vmul.f32 5.0, %v427_v47 }
 0x370   :  { %v429_v49 = vsub.f32 %v637_v42, %v428_v48 }
 0x372   :  { %432 = vst.msk [vmem:[#allocation2] sm:$0x10] %vm431_vm3, %v429_v49 }
 0x373   :  { %536 = shalt.err (!%p533_p4)
}
 0x374   :  { %s537_s27 = scalar_lea.hbm %s667_s7, 128 }
 0x375   :  { %p538_p5 = scmp.ne.s32.totalorder %s667_s7, %s537_s27  ;;  %p541_p6 = scmp.lt.u32.totalorder %s537_s27, %s667_s7 }
 0x377   :  { %p543_p7 = pnand %p541_p6, %p538_p5 }
 0x379   :  { %546 = shalt.err (!%p543_p7)
}
 0x37a   :  { %443 = dma.vmem_to_hbm [thread:$0]  %s441_s4, 128, %s667_s7, [#allocation3]  }
 0x37b   :  { %547 = dma.done.wait [#allocation3], 128  }
 0x37c   :  { %548 = vsyncadd [#allocation3], 4294967168 }
 0x37d   :  { %447 = vsyncpa [#allocation3], 1 }

</bundles_post_ra>
